<compile_context>
chip_gen: v7x
topology: tpu7x:2x2x1
jax: 0.10.0
libtpu: 0.0.40
codegen_flags: <defaults>
</compile_context>

<pallas_src>
import jax
import jax.numpy as jnp
from jax.experimental import pallas as pl
from jax.experimental.pallas import tpu as pltpu


# ----------------------------------------------------------------------------
# Fused kernel: linear -> relu -> linear -> relu -> linear -> sigmoid
# ----------------------------------------------------------------------------
def _vadecoder_kernel(x_ref, w1_ref, b1_ref, w2_ref, b2_ref, w3_ref, b3_ref, o_ref):
    # x_ref : (TB, L)      one batch tile of latents
    # w1/b1 : (L, H), (1, H)
    # w2/b2 : (H, H), (1, H)
    # w3/b3 : (H, Op), (1, Op)   (Op = O padded to a multiple of 128)
    # o_ref : (TB, Op)
    h = jnp.dot(x_ref[...], w1_ref[...], preferred_element_type=jnp.float32)
    h = jnp.maximum(h + b1_ref[...], 0.0)                       # F.relu

    h = jnp.dot(h, w2_ref[...], preferred_element_type=jnp.float32)
    h = jnp.maximum(h + b2_ref[...], 0.0)                       # F.relu

    z = jnp.dot(h, w3_ref[...], preferred_element_type=jnp.float32)
    z = z + b3_ref[...]
    o_ref[...] = jax.nn.sigmoid(z).astype(o_ref.dtype)          # F.sigmoid


def _round_up(n, m):
    return ((n + m - 1) // m) * m


# ----------------------------------------------------------------------------
# Wrapper
# ----------------------------------------------------------------------------
def vadecoder_forward(x, params, *, block_b=None, out_dtype=jnp.float32):
    """x: (B, latent_dim) float32.  Returns (B, output_dim) in (0, 1)."""
    w1, b1 = params["w1"], params["b1"]
    w2, b2 = params["w2"], params["b2"]
    w3, b3 = params["w3"], params["b3"]
    B, L = x.shape
    H = w1.shape[1]
    O = w3.shape[1]

    # Lane-dense output: pad O up to a multiple of 128 (784 -> 896).
    Op = _round_up(O, 128)
    if Op != O:
        w3 = jnp.pad(w3, ((0, 0), (0, Op - O)))
        b3 = jnp.pad(b3, ((0, Op - O),))

    # Sublane-dense batch: round B up to a multiple of 8 (f32 sublane count).
    # Padded tail rows are independent garbage, sliced off below.
    Bp = max(8, _round_up(B, 8))
    if Bp != B:
        x = jnp.pad(x, ((0, Bp - B), (0, 0)))

    # ---- batch tile selection -------------------------------------------------
    # MAX_TB=2048: double-buffered output tiles = 2*2048*896*4B ~= 14 MiB, safely
    # inside v7x's 64 MiB physical VMEM (and trivially inside v5e/v6e's 128 MiB).
    # Large tiles amortize per-step overhead; >=2 steps for big batches lets the
    # "parallel" grid axis shard across v7x's two TensorCores.
    MAX_TB = 2048
    if block_b is not None:
        tb = min(_round_up(block_b, 8), Bp)
    elif Bp <= 512:
        tb = Bp                                    # one step; everything resident
    else:
        n_steps = max(2, pl.cdiv(Bp, MAX_TB))      # >= 2 steps for megacore sharding
        tb = _round_up(pl.cdiv(Bp, n_steps), 8)
    grid = (pl.cdiv(Bp, tb),)                      # Pallas masks a partial last block

    out = pl.pallas_call(
        _vadecoder_kernel,
        out_shape=jax.ShapeDtypeStruct((Bp, Op), out_dtype),
        grid_spec=pltpu.PrefetchScalarGridSpec(
            num_scalar_prefetch=0,
            grid=grid,
            in_specs=[
                pl.BlockSpec((tb, L), lambda i: (i, 0)),   # latents: tiled over batch
                pl.BlockSpec((L, H), lambda i: (0, 0)),    # weights resident across steps
                pl.BlockSpec((1, H), lambda i: (0, 0)),
                pl.BlockSpec((H, H), lambda i: (0, 0)),
                pl.BlockSpec((1, H), lambda i: (0, 0)),
                pl.BlockSpec((H, Op), lambda i: (0, 0)),
                pl.BlockSpec((1, Op), lambda i: (0, 0)),
            ],
            out_specs=pl.BlockSpec((tb, Op), lambda i: (i, 0)),
        ),
        compiler_params=pltpu.CompilerParams(
            dimension_semantics=("parallel",),
            vmem_limit_bytes=48 * 1024 * 1024,
        ),
    )(x, w1, b1.reshape(1, H), w2, b2.reshape(1, H), w3, b3.reshape(1, Op))
    return out[:B, :O]


# ----------------------------------------------------------------------------
# Parameter init (weights stored as (in, out) so the kernel uses x @ W directly;
# numerically equivalent to PyTorch's Linear with W^T).
# ----------------------------------------------------------------------------
def init_params(key, latent_dim, hidden_dim, output_dim):
    def nrm(k, shape, scale=0.05):
        return scale * jax.random.normal(k, shape, dtype=jnp.float32)

    ks = jax.random.split(key, 6)
    return {
        "w1": nrm(ks[0], (latent_dim, hidden_dim)), "b1": nrm(ks[1], (hidden_dim,)),
        "w2": nrm(ks[2], (hidden_dim, hidden_dim)), "b2": nrm(ks[3], (hidden_dim,)),
        "w3": nrm(ks[4], (hidden_dim, output_dim)), "b3": nrm(ks[5], (output_dim,)),
    }


def _reference_forward(x, p):
    h = jax.nn.relu(x @ p["w1"] + p["b1"])
    h = jax.nn.relu(h @ p["w2"] + p["b2"])
    return jax.nn.sigmoid(h @ p["w3"] + p["b3"])


# ----------------------------------------------------------------------------
if __name__ == "__main__":
    key = jax.random.PRNGKey(0)
    k_params, k_data, k_big = jax.random.split(key, 3)

    LATENT_DIM = 8
    HIDDEN_DIM = 32
    OUTPUT_DIM = 28 * 28          # MNIST-style output (784, padded to 896 internally)
    BATCH = 2

    params = init_params(k_params, LATENT_DIM, HIDDEN_DIM, OUTPUT_DIM)

    # Small batch (exercises sublane rounding 2 -> 8 and the 1-step grid).
    x = jax.random.normal(k_data, (BATCH, LATENT_DIM), dtype=jnp.float32)
    gen = vadecoder_forward(x, params)
    jax.block_until_ready(gen)
    assert gen.shape == (BATCH, OUTPUT_DIM)
    assert bool(jnp.all((gen >= 0.0) & (gen <= 1.0)))
    ref = _reference_forward(x, params)
    assert bool(jnp.max(jnp.abs(gen - ref)) < 1e-5)

    # Larger batch (exercises the multi-step tiled grid path).
    xb = jax.random.normal(k_big, (1200, LATENT_DIM), dtype=jnp.float32)
    gen_b = vadecoder_forward(xb, params)
    jax.block_until_ready(gen_b)
    assert gen_b.shape == (1200, OUTPUT_DIM)
    ref_b = _reference_forward(xb, params)
    assert bool(jnp.max(jnp.abs(gen_b - ref_b)) < 1e-5)

    print("KERNEL_OK")
</pallas_src>

<mosaic_0001>
module attributes {stable_mosaic.version = 11 : i64} {
  func.func @_vadecoder_kernel(%arg0: i32, %arg1: memref<8x8xf32, #tpu.memory_space<vmem>>, %arg2: memref<8x32xf32, #tpu.memory_space<vmem>>, %arg3: memref<1x32xf32, #tpu.memory_space<vmem>>, %arg4: memref<32x32xf32, #tpu.memory_space<vmem>>, %arg5: memref<1x32xf32, #tpu.memory_space<vmem>>, %arg6: memref<32x896xf32, #tpu.memory_space<vmem>>, %arg7: memref<1x896xf32, #tpu.memory_space<vmem>>, %arg8: memref<8x896xf32, #tpu.memory_space<vmem>>) attributes {dimension_semantics = [#tpu.dimension_semantics<parallel>], iteration_bounds = array<i64: 1>, scalar_prefetch = 0 : i64, scratch_operands = 0 : i64, tpu.core_type = #tpu.core_type<tc>, window_params = [{transform_indices = @transform_0, window_bounds = array<i64: 8, 8>}, {pipeline_mode = #tpu.pipeline_mode<synchronous>, transform_indices = @transform_1, window_bounds = array<i64: 8, 32>}, {pipeline_mode = #tpu.pipeline_mode<synchronous>, transform_indices = @transform_2, window_bounds = array<i64: 1, 32>}, {pipeline_mode = #tpu.pipeline_mode<synchronous>, transform_indices = @transform_3, window_bounds = array<i64: 32, 32>}, {pipeline_mode = #tpu.pipeline_mode<synchronous>, transform_indices = @transform_4, window_bounds = array<i64: 1, 32>}, {pipeline_mode = #tpu.pipeline_mode<synchronous>, transform_indices = @transform_5, window_bounds = array<i64: 32, 896>}, {pipeline_mode = #tpu.pipeline_mode<synchronous>, transform_indices = @transform_6, window_bounds = array<i64: 1, 896>}, {transform_indices = @transform_7, window_bounds = array<i64: 8, 896>}]} {
    %c0 = arith.constant 0 : index
    %c0_0 = arith.constant 0 : index
    %0 = vector.load %arg1[%c0, %c0_0] : memref<8x8xf32, #tpu.memory_space<vmem>>, vector<8x8xf32>
    %c0_1 = arith.constant 0 : index
    %c0_2 = arith.constant 0 : index
    %1 = vector.load %arg2[%c0_1, %c0_2] : memref<8x32xf32, #tpu.memory_space<vmem>>, vector<8x32xf32>
    %cst = arith.constant dense<0.000000e+00> : vector<8x32xf32>
    %2 = tpu.matmul %0, %1, %cst {dimension_numbers = #tpu.dot_dimension_numbers<[1], [0], [0], [1], [0, 0, 1, 1], [], []>} : vector<8x8xf32>, vector<8x32xf32>, vector<8x32xf32> -> vector<8x32xf32>
    %c0_3 = arith.constant 0 : index
    %c0_4 = arith.constant 0 : index
    %3 = vector.load %arg3[%c0_3, %c0_4] : memref<1x32xf32, #tpu.memory_space<vmem>>, vector<1x32xf32>
    %4 = vector.broadcast %3 : vector<1x32xf32> to vector<8x32xf32>
    %5 = arith.addf %2, %4 : vector<8x32xf32>
    %cst_5 = arith.constant 0.000000e+00 : f32
    %6 = vector.broadcast %cst_5 : f32 to vector<8x32xf32>
    %7 = arith.maximumf %5, %6 : vector<8x32xf32>
    %c0_6 = arith.constant 0 : index
    %c0_7 = arith.constant 0 : index
    %8 = vector.load %arg4[%c0_6, %c0_7] : memref<32x32xf32, #tpu.memory_space<vmem>>, vector<32x32xf32>
    %cst_8 = arith.constant dense<0.000000e+00> : vector<8x32xf32>
    %9 = tpu.matmul %7, %8, %cst_8 {dimension_numbers = #tpu.dot_dimension_numbers<[1], [0], [0], [1], [0, 0, 1, 1], [], []>} : vector<8x32xf32>, vector<32x32xf32>, vector<8x32xf32> -> vector<8x32xf32>
    %c0_9 = arith.constant 0 : index
    %c0_10 = arith.constant 0 : index
    %10 = vector.load %arg5[%c0_9, %c0_10] : memref<1x32xf32, #tpu.memory_space<vmem>>, vector<1x32xf32>
    %11 = vector.broadcast %10 : vector<1x32xf32> to vector<8x32xf32>
    %12 = arith.addf %9, %11 : vector<8x32xf32>
    %cst_11 = arith.constant 0.000000e+00 : f32
    %13 = vector.broadcast %cst_11 : f32 to vector<8x32xf32>
    %14 = arith.maximumf %12, %13 : vector<8x32xf32>
    %c0_12 = arith.constant 0 : index
    %c0_13 = arith.constant 0 : index
    %15 = vector.load %arg6[%c0_12, %c0_13] : memref<32x896xf32, #tpu.memory_space<vmem>>, vector<32x896xf32>
    %cst_14 = arith.constant dense<0.000000e+00> : vector<8x896xf32>
    %16 = tpu.matmul %14, %15, %cst_14 {dimension_numbers = #tpu.dot_dimension_numbers<[1], [0], [0], [1], [0, 0, 1, 1], [], []>} : vector<8x32xf32>, vector<32x896xf32>, vector<8x896xf32> -> vector<8x896xf32>
    %c0_15 = arith.constant 0 : index
    %c0_16 = arith.constant 0 : index
    %17 = vector.load %arg7[%c0_15, %c0_16] : memref<1x896xf32, #tpu.memory_space<vmem>>, vector<1x896xf32>
    %18 = vector.broadcast %17 : vector<1x896xf32> to vector<8x896xf32>
    %19 = arith.addf %16, %18 : vector<8x896xf32>
    %20 = arith.negf %19 : vector<8x896xf32>
    %21 = math.exp %20 : vector<8x896xf32>
    %cst_17 = arith.constant 1.000000e+00 : f32
    %22 = vector.broadcast %cst_17 : f32 to vector<8x896xf32>
    %23 = arith.addf %22, %21 : vector<8x896xf32>
    %24 = arith.divf %22, %23 : vector<8x896xf32>
    %c0_18 = arith.constant 0 : index
    %c0_19 = arith.constant 0 : index
    %25 = vector.load %arg8[%c0_18, %c0_19] : memref<8x896xf32, #tpu.memory_space<vmem>>, vector<8x896xf32>
    tpu.vector_store %arg8[%c0_18, %c0_19], %24 {strides = array<i32>} : memref<8x896xf32, #tpu.memory_space<vmem>>, vector<8x896xf32>,
    return
  }
  func.func @transform_0(%arg0: i32) -> (i32, i32) {
    %c0_i32 = arith.constant 0 : i32
    %c0_i32_0 = arith.constant 0 : i32
    return %arg0, %c0_i32 : i32, i32
  }
  func.func @transform_1(%arg0: i32) -> (i32, i32) {
    %c0_i32 = arith.constant 0 : i32
    %c0_i32_0 = arith.constant 0 : i32
    %c0_i32_1 = arith.constant 0 : i32
    return %c0_i32, %c0_i32_0 : i32, i32
  }
  func.func @transform_2(%arg0: i32) -> (i32, i32) {
    %c0_i32 = arith.constant 0 : i32
    %c0_i32_0 = arith.constant 0 : i32
    %c0_i32_1 = arith.constant 0 : i32
    return %c0_i32, %c0_i32_0 : i32, i32
  }
  func.func @transform_3(%arg0: i32) -> (i32, i32) {
    %c0_i32 = arith.constant 0 : i32
    %c0_i32_0 = arith.constant 0 : i32
    %c0_i32_1 = arith.constant 0 : i32
    return %c0_i32, %c0_i32_0 : i32, i32
  }
  func.func @transform_4(%arg0: i32) -> (i32, i32) {
    %c0_i32 = arith.constant 0 : i32
    %c0_i32_0 = arith.constant 0 : i32
    %c0_i32_1 = arith.constant 0 : i32
    return %c0_i32, %c0_i32_0 : i32, i32
  }
  func.func @transform_5(%arg0: i32) -> (i32, i32) {
    %c0_i32 = arith.constant 0 : i32
    %c0_i32_0 = arith.constant 0 : i32
    %c0_i32_1 = arith.constant 0 : i32
    return %c0_i32, %c0_i32_0 : i32, i32
  }
  func.func @transform_6(%arg0: i32) -> (i32, i32) {
    %c0_i32 = arith.constant 0 : i32
    %c0_i32_0 = arith.constant 0 : i32
    %c0_i32_1 = arith.constant 0 : i32
    return %c0_i32, %c0_i32_0 : i32, i32
  }
  func.func @transform_7(%arg0: i32) -> (i32, i32) {
    %c0_i32 = arith.constant 0 : i32
    %c0_i32_0 = arith.constant 0 : i32
    return %arg0, %c0_i32 : i32, i32
  }
}

</mosaic_0001>

<bundles_post_ra>
// kernel: tpu_custom_call.1
= control target key start
LH: loop header
LB: loop body
LE: loop exit
PB: predicated region body
PF: predicated region fallthrough
CT: control target
= control target key end

     0   :  { %12 = vsyncpa [#allocation3], 0  ;;  %s1053_s0 = inlined_call_operand.hbm [shape: f32[8,8], index: 0, kind: input, shape index: {}]   ;;  %s1054_s1 = inlined_call_operand.hbm [shape: f32[8,32], index: 1, kind: input, shape index: {}]   ;;  %s1055_s2 = inlined_call_operand.vmem [shape: f32[1,32], index: 2, kind: input, shape index: {}]   ;;  %s1056_s3 = inlined_call_operand.hbm [shape: f32[32,32], index: 3, kind: input, shape index: {}]   ;;  %s1057_s4 = inlined_call_operand.vmem [shape: f32[1,32], index: 4, kind: input, shape index: {}]   ;;  %s1058_s5 = inlined_call_operand.hbm [shape: f32[32,896], index: 5, kind: input, shape index: {}]   ;;  %s1059_s6 = inlined_call_operand.vmem [shape: f32[1,896], index: 6, kind: input, shape index: {}]   ;;  %s1060_s7 = inlined_call_operand.hbm [shape: f32[8,896], index: 7, kind: output, shape index: {}]  }
   0x1   :  { %13 = vsyncpa [#allocation6], 0 }
   0x2   :  { %14 = vsyncpa [#allocation9], 0 }
   0x3   :  { %15 = vsyncpa [#allocation4], 0  ;;  %s913_s24 = smov [#allocation5]   ;;  %s914_s26 = smov [#allocation2]  }
   0x4   :  { %s32_s25 = sshll.u32 %s913_s24, 4  ;;  %s22_s27 = sshll.u32 %s914_s26, 4  ;;  %s33_s25 = int_to_ptr.vmem [resolvable:$true] %s32_s25  ;;  %s23_s27 = int_to_ptr.vmem [resolvable:$true] %s22_s27 }
   0x5   :  { %s795_s30 = scalar_lea.hbm %s1054_s1, 128 }
   0x6   :  { %p796_p0 = scmp.ne.s32.totalorder %s1054_s1, %s795_s30  ;;  %p799_p1 = scmp.lt.u32.totalorder %s795_s30, %s1054_s1 }
   0x8   :  { %p801_p2 = pnand %p799_p1, %p796_p0 }
   0xa   :  { %804 = shalt.err (!%p801_p2)
}
   0xb   :  { %s805_s12 = scalar_lea.vmem %s33_s25, 128  ;;  %p810_p4 = scmp.lt.s32.totalorder %s33_s25, %s33_s25 }
   0xc   :  { %p806_p3 = scmp.ne.s32.totalorder %s33_s25, %s805_s12  ;;  %p811_p5 = scmp.lt.s32.totalorder %s805_s12, %s805_s12 }
   0xe   :  { %p812_p6 = por %p811_p5, %p810_p4 }
  0x10   :  { %p813_p7 = pnand %p812_p6, %p806_p3 }
  0x12   :  { %816 = shalt.err (!%p813_p7)
}
  0x13   :  { %35 = dma.hbm_to_vmem [thread:$0]  %s1054_s1, 128, %s33_s25, [#allocation6]  }
  0x14   :  { %s817_s17 = scalar_lea.hbm %s1053_s0, 128 }
  0x15   :  { %p818_p8 = scmp.ne.s32.totalorder %s1053_s0, %s817_s17  ;;  %p821_p9 = scmp.lt.u32.totalorder %s817_s17, %s1053_s0 }
  0x17   :  { %p823_p10 = pnand %p821_p9, %p818_p8 }
  0x19   :  { %826 = shalt.err (!%p823_p10)
}
  0x1a   :  { %s827_s22 = scalar_lea.vmem %s23_s27, 128  ;;  %p832_p12 = scmp.lt.s32.totalorder %s23_s27, %s23_s27 }
  0x1b   :  { %p828_p11 = scmp.ne.s32.totalorder %s23_s27, %s827_s22  ;;  %p833_p13 = scmp.lt.s32.totalorder %s827_s22, %s827_s22 }
  0x1d   :  { %p834_p0 = por %p833_p13, %p832_p12 }
  0x1f   :  { %p835_p1 = pnand %p834_p0, %p828_p11 }
  0x21   :  { %838 = shalt.err (!%p835_p1)
}
  0x22   :  { %25 = dma.hbm_to_vmem [thread:$0]  %s1053_s0, 128, %s23_s27, [#allocation3]  }
  0x23   :  { %s915_s24 = smov [#allocation7]   ;;  %s839_s29 = scalar_lea.hbm %s1056_s3, 512 }
  0x24   :  { %s43_s25 = sshll.u32 %s915_s24, 4  ;;  %p840_p2 = scmp.ne.s32.totalorder %s1056_s3, %s839_s29  ;;  %s44_s25 = int_to_ptr.vmem [resolvable:$true] %s43_s25 }
  0x25   :  { %p843_p3 = scmp.lt.u32.totalorder %s839_s29, %s1056_s3 }
  0x27   :  { %p845_p4 = pnand %p843_p3, %p840_p2 }
  0x29   :  { %848 = shalt.err (!%p845_p4)
}
  0x2a   :  { %s849_s11 = scalar_lea.vmem %s44_s25, 512  ;;  %p854_p6 = scmp.lt.s32.totalorder %s44_s25, %s44_s25 }
  0x2b   :  { %p850_p5 = scmp.ne.s32.totalorder %s44_s25, %s849_s11  ;;  %p855_p7 = scmp.lt.s32.totalorder %s849_s11, %s849_s11 }
  0x2d   :  { %p856_p8 = por %p855_p7, %p854_p6 }
  0x2f   :  { %p857_p9 = pnand %p856_p8, %p850_p5 }
  0x31   :  { %860 = shalt.err (!%p857_p9)
}
  0x32   :  { %s916_s0 = smov 128   ;;  %s917_s27 = smov 8  }
  0x33   :  { %49 = dma.hbm_to_vmem [thread:$0]  %s1056_s3, 512, %s44_s25, [#allocation6], %s916_s0, %s916_s0, %s917_s27  }
  0x34   :  { %s918_s14 = smov [#allocation8]   ;;  %s861_s18 = scalar_lea.hbm %s1058_s5, 3584 }
  0x35   :  { %s57_s15 = sshll.u32 %s918_s14, 4  ;;  %p862_p10 = scmp.ne.s32.totalorder %s1058_s5, %s861_s18  ;;  %s58_s15 = int_to_ptr.vmem [resolvable:$true] %s57_s15 }
  0x36   :  { %p865_p11 = scmp.lt.u32.totalorder %s861_s18, %s1058_s5 }
  0x38   :  { %p867_p12 = pnand %p865_p11, %p862_p10 }
  0x3a   :  { %870 = shalt.err (!%p867_p12)
}
  0x3b   :  { %s871_s1 = scalar_lea.vmem %s58_s15, 3584  ;;  %p876_p0 = scmp.lt.s32.totalorder %s58_s15, %s58_s15 }
  0x3c   :  { %p872_p13 = scmp.ne.s32.totalorder %s58_s15, %s871_s1  ;;  %p877_p1 = scmp.lt.s32.totalorder %s871_s1, %s871_s1 }
  0x3e   :  { %p878_p2 = por %p877_p1, %p876_p0 }
  0x40   :  { %p879_p3 = pnand %p878_p2, %p872_p13 }
  0x42   :  { %882 = shalt.err (!%p879_p3)
}
  0x43   :  { %s919_s3 = smov 896   ;;  %s920_s23 = smov 56  }
  0x44   :  { %63 = dma.hbm_to_vmem [thread:$0]  %s1058_s5, 3584, %s58_s15, [#allocation9], %s919_s3, %s919_s3, %s920_s23  }
  0x45   :  { %905 = dma.done.wait [#allocation3], 128  }
  0x46   :  { %906 = vsyncadd [#allocation3], 4294967168 }
  0x47   :  { %907 = dma.done.wait [#allocation6], 640  }
  0x48   :  { %908 = vsyncadd [#allocation6], 4294966656 }
  0x49   :  { %909 = dma.done.wait [#allocation9], 3584  }
  0x4a   :  { %910 = vsyncadd [#allocation9], 4294963712  ;;  %v921_v0 = vmov 0.0   ;;  %vm922_vm0 = vmmov 0   ;;  %v923_v1 = vmov 0.0|0.0   ;;  %vm87_vm1 = vcmask 64512  }
  0x4b   :  { %692 = vmatprep.subr.mxu0 %v921_v0  ;;  %694 = vmatprep.mubr.msk.f32.mxu0 %vm922_vm0, %v921_v0  ;;  %v79_v2 = vld [vmem:[#allocation5] sm:$0xff]  ;;  %v78_v3 = vld [vmem:[#allocation2] sm:$0xff]  ;;  %v162_v4 = vld [vmem:[#allocation7] sm:$0xff]  ;;  %vm173_vm2 = vcmask 261120   ;;  %v278_v62 = vlaneseq }
  0x4c   :  { %719 = vmatprep.subr.bf16.mxu1 %v923_v1  ;;  %705 = vmatprep.mubr.msk.f32.mxu1 %vm922_vm0, %v921_v0  ;;  %v163_v5 = vld [vmem:[#allocation7 + $0x8] sm:$0xff]  ;;  %v164_v7 = vld [vmem:[#allocation7 + $0x10] sm:$0xff]  ;;  %v165_v8 = vld [vmem:[#allocation7 + $0x18] sm:$0xff] }
  0x4d   :  { %693 = vmatpush3.msra.mxu0 %v79_v2  ;;  %v720_v6 = vpack.c.bf16 %v163_v5, %v162_v4  ;;  %v723_v9 = vpack.c.bf16 %v165_v8, %v164_v7  ;;  %v249_v10 = vld [vmem:[#allocation8 + $0x8] sm:$0xff]  ;;  %v256_v11 = vld [vmem:[#allocation8 + $0x40] sm:$0xff]  ;;  %v251_v12 = vld [vmem:[#allocation8 + $0x18] sm:$0xff]  ;;  %v279_v63 = vshrl.u32 %v278_v62, 7 }
  0x4e   :  { %695 = vmatmul.mubr.msk.f32.vlgmr.msra.gmra.mrb[0].mxu0 %vm87_vm1, %v78_v3  ;;  %v725_v13 = vpack.c.bf16 %v256_v11, %v249_v10  ;;  %v258_v14 = vld [vmem:[#allocation8 + $0x50] sm:$0xff]  ;;  %v248_v15 = vld [vmem:[#allocation8] sm:$0xff]  ;;  %v255_v16 = vld [vmem:[#allocation8 + $0x38] sm:$0xff] }
  0x4f   :  { %380 = vmatprep.mubr.f32.mxu0 %v921_v0  ;;  %721 = vmatpush3.bf16.msra.mxu1 %v720_v6  ;;  %v733_v17 = vpack.c.bf16 %v258_v14, %v251_v12  ;;  %v727_v18 = vpack.c.bf16 %v255_v16, %v248_v15  ;;  %v665_v19 = vld [vmem:[%s1055_s2] ss:$0 sm:$0xff]  ;;  %v257_v21 = vld [vmem:[#allocation8 + $0x48] sm:$0xff]  ;;  %v263_v27 = vld [vmem:[#allocation8 + $0x78] sm:$0xff]  ;;  %v280_v2 = vsub.s32 0, %v279_v63  ;;  %v288_v3 = vsub.s32 2, %v279_v63 }
  0x50   :  { %722 = vmatprep.subr.bf16.mxu1 %v923_v1  ;;  %726 = vmatprep.subr.bf16.mxu0 %v725_v13  ;;  %v250_v20 = vld [vmem:[#allocation8 + $0x10] sm:$0xff]  ;;  %v265_v29 = vld [vmem:[#allocation8 + $0x88] sm:$0xff]  ;;  %v272_v31 = vld [vmem:[#allocation8 + $0xc0] sm:$0xff]  ;;  %v292_v5 = vsub.s32 3, %v279_v63  ;;  %v296_v15 = vsub.s32 4, %v279_v63  ;;  %v304_v16 = vsub.s32 6, %v279_v63 }
  0x51   :  { %728 = vmatpush1.bf16.msra.mxu0 %v727_v18  ;;  %v735_v25 = vpack.c.bf16 %v257_v21, %v250_v20  ;;  %v270_v28 = vld [vmem:[#allocation8 + $0xb0] sm:$0xff]  ;;  %v269_v33 = vld [vmem:[#allocation8 + $0xa8] sm:$0xff]  ;;  %v737_v34 = vpack.c.bf16 %v272_v31, %v265_v29  ;;  %v264_v36 = vld [vmem:[#allocation8 + $0x80] sm:$0xff] }
  0x52   :  { %v729_v30 = vpack.c.bf16 %v270_v28, %v263_v27  ;;  %v262_v32 = vld [vmem:[#allocation8 + $0x70] sm:$0xff]  ;;  %v271_v37 = vld [vmem:[#allocation8 + $0xb8] sm:$0xff]  ;;  %v253_v39 = vld [vmem:[#allocation8 + $0x28] sm:$0xff] }
  0x53   :  { %724 = vmatpush3.bf16.msra.mxu1 %v723_v9  ;;  %v731_v35 = vpack.c.bf16 %v269_v33, %v262_v32  ;;  %v739_v38 = vpack.c.bf16 %v271_v37, %v264_v36  ;;  %v260_v40 = vld [vmem:[#allocation8 + $0x60] sm:$0xff]  ;;  %v667_v42 = vld [vmem:[%s1057_s4] ss:$0 sm:$0xff]  ;;  %v259_v44 = vld [vmem:[#allocation8 + $0x58] sm:$0xff] }
  0x54   :  { %734 = vmatprep.subr.bf16.mxu1 %v733_v17  ;;  %730 = vmatprep.subr.bf16.mxu0 %v729_v30  ;;  %v741_v41 = vpack.c.bf16 %v260_v40, %v253_v39  ;;  %v252_v43 = vld [vmem:[#allocation8 + $0x20] sm:$0xff]  ;;  %v254_v45 = vld [vmem:[#allocation8 + $0x30] sm:$0xff]  ;;  %v261_v46 = vld [vmem:[#allocation8 + $0x68] sm:$0xff] }
  0x55   :  { %732 = vmatpush1.bf16.msra.mxu0 %v731_v35  ;;  %v267_v48 = vld [vmem:[#allocation8 + $0x98] sm:$0xff]  ;;  %v274_v49 = vld [vmem:[#allocation8 + $0xd0] sm:$0xff]  ;;  %v743_v52 = vpack.c.bf16 %v259_v44, %v252_v43  ;;  %v750_v53 = vpack.c.bf16 %v261_v46, %v254_v45  ;;  %v273_v57 = vld [vmem:[#allocation8 + $0xc8] sm:$0xff] }
  0x56   :  { %742 = vmatprep.subr.bf16.mxu0 %v741_v41  ;;  %v266_v54 = vld [vmem:[#allocation8 + $0x90] sm:$0xff]  ;;  %v745_v56 = vpack.c.bf16 %v274_v49, %v267_v48  ;;  %v268_v58 = vld [vmem:[#allocation8 + $0xa0] sm:$0xff]  ;;  %v275_v59 = vld [vmem:[#allocation8 + $0xd8] sm:$0xff] }
  0x57   :  { %v747_v60 = vpack.c.bf16 %v273_v57, %v266_v54  ;;  %v753_v61 = vpack.c.bf16 %v275_v59, %v268_v58  ;;  %v276_v4 = vld [vmem:[%s1059_s6] sm:$0xff]  ;;  %s924_s6 = smov [#allocation10]  }
  0x58   :  { %v281_v6 = vrot.slane %v276_v4, %v280_v2  ;;  %v289_v7 = vrot.slane %v276_v4, %v288_v3  ;;  %s654_s30 = sshll.u32 %s924_s6, 4  ;;  %s655_s30 = int_to_ptr.vmem [resolvable:$true] %s654_s30 }
  0x59   :  { %s883_s8 = scalar_lea.vmem %s655_s30, 896  ;;  %p888_p5 = scmp.lt.s32.totalorder %s655_s30, %s655_s30 }
  0x5a   :  { %p884_p4 = scmp.ne.s32.totalorder %s655_s30, %s883_s8  ;;  %p889_p6 = scmp.lt.s32.totalorder %s883_s8, %s883_s8 }
  0x5c   :  { %p890_p7 = por %p889_p6, %p888_p5 }
  0x5e   :  { %p891_p8 = pnand %p890_p7, %p884_p4 }
 0x121   :  { %v157_v22 = vpop.f32.mrb[0].mxu0 }
 0x122   :  { %v158_v23 = vadd.f32 %v665_v19, %v157_v22  ;;  %v696_v24 = vpop.f32.mrb[1].mxu0  ;;  %v300_v19 = vsub.s32 5, %v279_v63 }
 0x123   :  { %v297_v24 = vrot.slane %v276_v4, %v296_v15 }
 0x124   :  { %v161_v26 = vmax.f32 %v158_v23, 0.0 }
 0x126   :  { %706 = vmatmul.mubr.msk.f32.vlgmr.msra.gmra.mrb[0].mxu1 %vm173_vm2, %v161_v26  ;;  %v301_v26 = vrot.slane %v276_v4, %v300_v19 }
 0x127   :  { %736 = vmatpush1.bf16.msra.mxu1 %v735_v25  ;;  %451 = vmatprep.mubr.f32.mxu1 %v921_v0  ;;  %v305_v25 = vrot.slane %v276_v4, %v304_v16 }
 0x128   :  { %738 = vmatprep.subr.bf16.mxu1 %v737_v34 }
 0x12b   :  { %740 = vmatpush1.bf16.msra.mxu1 %v739_v38 }
 0x12c   :  { %749 = vmatprep.subr.bf16.mxu1 %v923_v1 }
 0x1f9   :  { %v243_v47 = vpop.f32.mrb[0].mxu1 }
 0x1fa   :  { %v244_v50 = vadd.f32 %v667_v42, %v243_v47  ;;  %v707_v51 = vpop.f32.mrb[1].mxu1 }
 0x1fc   :  { %v247_v55 = vmax.f32 %v244_v50, 0.0 }
 0x1fe   :  { %669 = vmatmul.mubr.msk.f32.vlgmr.msra.gmra.mrb[2].mxu0 %vm173_vm2, %v247_v55  ;;  %670 = vmatmul.mubr.msk.f32.vlgmr.msra.gmra.mrb[2].mxu1 %vm173_vm2, %v247_v55 }
 0x1ff   :  { %744 = vmatpush1.bf16.msra.mxu0 %v743_v52  ;;  %751 = vmatpush3.bf16.msra.mxu1 %v750_v53 }
 0x200   :  { %746 = vmatprep.subr.bf16.mxu0 %v745_v56  ;;  %752 = vmatprep.subr.bf16.mxu1 %v923_v1  ;;  %v284_v1 = vsub.s32 1, %v279_v63 }
 0x201   :  { %522 = vmatprep.mubr.f32.mxu0 %v921_v0  ;;  %716 = vmatprep.mubr.msk.f32.mxu1 %vm922_vm0, %v921_v0  ;;  %v293_v0 = vrot.slane %v276_v4, %v292_v5 }
 0x202   :  { %v285_v8 = vrot.slane %v276_v4, %v284_v1 }
 0x203   :  { %748 = vmatpush1.bf16.msra.mxu0 %v747_v60  ;;  %754 = vmatpush3.bf16.msra.mxu1 %v753_v61 }
 0x206   :  { %671 = vmatmul.mubr.msk.f32.vlgmr.msra.gmra.mrb[4].mxu0 %vm173_vm2, %v247_v55  ;;  %717 = vmatmul.mubr.msk.f32.vlgmr.msra.gmra.mrb[4].mxu1 %vm173_vm2, %v247_v55 }
 0x2d1   :  { %v382_v9 = vpop.f32.mrb[2].mxu0  ;;  %v453_v10 = vpop.f32.mrb[2].mxu1 }
 0x2d2   :  { %v383_v11 = vadd.f32 %v382_v9, %v281_v6  ;;  %v454_v12 = vadd.f32 %v453_v10, %v289_v7  ;;  %v384_v13 = vpop.f32.mrb[3].mxu0  ;;  %v455_v14 = vpop.f32.mrb[3].mxu1 }
 0x2d3   :  { %v385_v17 = vadd.f32 %v384_v13, %v285_v8  ;;  %v456_v18 = vadd.f32 %v455_v14, %v293_v0 }
 0x2d4   :  { %v673_v20 = vmul.f32 -1.442695, %v383_v11  ;;  %v675_v21 = vmul.f32 -1.442695, %v454_v12 }
 0x2d5   :  { %v674_v22 = vmul.f32 -1.442695, %v385_v17  ;;  %v676_v23 = vmul.f32 -1.442695, %v456_v18 }
 0x2d6   :  { %767 = vpow2.f32 %v673_v20 }
 0x2d7   :  { %769 = vpow2.f32 %v675_v21 }
 0x2d8   :  { %771 = vpow2.f32 %v674_v22 }
 0x2d9   :  { %773 = vpow2.f32 %v676_v23  ;;  %v524_v27 = vpop.f32.mrb[4].mxu0  ;;  %v595_v28 = vpop.f32.mrb[4].mxu1 }
 0x2da   :  { %v525_v29 = vadd.f32 %v524_v27, %v297_v24  ;;  %v596_v30 = vadd.f32 %v595_v28, %v305_v25  ;;  %v526_v31 = vpop.f32.mrb[5].mxu0  ;;  %v718_v32 = vpop.f32.mrb[5].mxu1 }
 0x2db   :  { %v527_v33 = vadd.f32 %v526_v31, %v301_v26 }
 0x2dc   :  { %v677_v34 = vmul.f32 -1.442695, %v525_v29  ;;  %v679_v35 = vmul.f32 -1.442695, %v596_v30 }
 0x2dd   :  { %v678_v36 = vmul.f32 -1.442695, %v527_v33 }
 0x2de   :  { %775 = vpow2.f32 %v677_v34 }
 0x2df   :  { %777 = vpow2.f32 %v679_v35 }
 0x2e0   :  { %v768_v37 = vpop.eup %767  ;;  %779 = vpow2.f32 %v678_v36 }
 0x2e1   :  { %v770_v38 = vpop.eup %769  ;;  %v620_v39 = vadd.f32 1.0, %v768_v37 }
 0x2e2   :  { %v772_v40 = vpop.eup %771  ;;  %v622_v41 = vadd.f32 1.0, %v770_v38 }
 0x2e3   :  { %v774_v42 = vpop.eup %773  ;;  %781 = vrcp.f32 %v620_v39  ;;  %v621_v43 = vadd.f32 1.0, %v772_v40 }
 0x2e4   :  { %783 = vrcp.f32 %v622_v41  ;;  %v623_v44 = vadd.f32 1.0, %v774_v42 }
 0x2e5   :  { %785 = vrcp.f32 %v621_v43 }
 0x2e6   :  { %787 = vrcp.f32 %v623_v44 }
 0x2e8   :  { %v776_v45 = vpop.eup %775 }
 0x2e9   :  { %v778_v46 = vpop.eup %777  ;;  %v624_v47 = vadd.f32 1.0, %v776_v45 }
 0x2ea   :  { %v780_v48 = vpop.eup %779  ;;  %v626_v49 = vadd.f32 1.0, %v778_v46 }
 0x2eb   :  { %789 = vrcp.f32 %v624_v47  ;;  %v625_v50 = vadd.f32 1.0, %v780_v48 }
 0x2ec   :  { %791 = vrcp.f32 %v626_v49 }
 0x2ed   :  { %v782_v51 = vpop.eup %781  ;;  %793 = vrcp.f32 %v625_v50 }
 0x2ee   :  { %v784_v52 = vpop.eup %783  ;;  %641 = vst [vmem:[#allocation10] sm:$0xff] %v782_v51 }
 0x2ef   :  { %v786_v53 = vpop.eup %785  ;;  %643 = vst [vmem:[#allocation10 + $0x10] sm:$0xff] %v784_v52 }
 0x2f0   :  { %v788_v54 = vpop.eup %787  ;;  %642 = vst [vmem:[#allocation10 + $0x8] sm:$0xff] %v786_v53 }
 0x2f1   :  { %644 = vst [vmem:[#allocation10 + $0x18] sm:$0xff] %v788_v54 }
 0x2f5   :  { %v790_v55 = vpop.eup %789 }
 0x2f6   :  { %v792_v56 = vpop.eup %791  ;;  %645 = vst [vmem:[#allocation10 + $0x20] sm:$0xff] %v790_v55 }
 0x2f7   :  { %v794_v57 = vpop.eup %793  ;;  %647 = vst [vmem:[#allocation10 + $0x30] sm:$0xff] %v792_v56 }
 0x2f8   :  { %646 = vst [vmem:[#allocation10 + $0x28] sm:$0xff] %v794_v57 }
 0x2f9   :  { %894 = shalt.err (!%p891_p8)
}
 0x2fa   :  { %s895_s11 = scalar_lea.hbm %s1060_s7, 896 }
 0x2fb   :  { %p896_p9 = scmp.ne.s32.totalorder %s1060_s7, %s895_s11  ;;  %p899_p10 = scmp.lt.u32.totalorder %s895_s11, %s1060_s7 }
 0x2fd   :  { %p901_p11 = pnand %p899_p10, %p896_p9 }
 0x2ff   :  { %904 = shalt.err (!%p901_p11)
}
 0x300   :  { %657 = dma.vmem_to_hbm [thread:$0]  %s655_s30, 896, %s1060_s7, [#allocation4]  }
 0x301   :  { %911 = dma.done.wait [#allocation4], 896  }
 0x302   :  { %912 = vsyncadd [#allocation4], 4294966400 }
 0x303   :  { %661 = vsyncpa [#allocation3], 1 }
 0x304   :  { %662 = vsyncpa [#allocation6], 1 }
 0x305   :  { %663 = vsyncpa [#allocation9], 1 }
 0x306   :  { %664 = vsyncpa [#allocation4], 1 }

</bundles_post_ra>
